<compile_context>
chip_gen: v6e
topology: v6e:2x2x1
jax: 0.10.0
libtpu: 0.0.40
codegen_flags: <defaults>
</compile_context>

<pallas_src>
import math

import jax
import jax.numpy as jnp
from jax.experimental import pallas as pl
from jax.experimental.pallas import tpu as pltpu


def _round_up(v, m):
    return ((v + m - 1) // m) * m


# --------------------------------------------------------------------------
# Kernels
# --------------------------------------------------------------------------
def gcn_kernel(x_ref, w_ref, adj_ref, b_ref, o_ref):
    # support = x @ W   (MXU, f32 accumulation)
    support = jnp.dot(x_ref[...], w_ref[...], preferred_element_type=jnp.float32)
    # output = adj @ support + bias
    out = jnp.dot(adj_ref[...], support, preferred_element_type=jnp.float32)
    # TODO(synk): torch's `assert True not in torch.isnan(output)` is a host-side
    # runtime assert; no in-kernel equivalent emitted (checked in __main__).
    o_ref[...] = (out + b_ref[...]).astype(o_ref.dtype)


def gcn_batched_kernel(x_ref, w_ref, adj_ref, b_ref, o_ref):
    # Per-graph block: x_ref (1, Np, in_f), adj_ref (1, Np, Np),
    # shared w_ref (in_f, Fp) and b_ref (Np, Fp), o_ref (1, Np, Fp).
    support = jnp.dot(x_ref[0], w_ref[...], preferred_element_type=jnp.float32)
    out = jnp.dot(adj_ref[0], support, preferred_element_type=jnp.float32)
    o_ref[0] = (out + b_ref[...]).astype(o_ref.dtype)


# --------------------------------------------------------------------------
# Wrappers
# --------------------------------------------------------------------------
def graph_convolution_layer(x, adj, weight, bias):
    """Fused GCN layer: adj @ (x @ weight) + bias, one grid-less Pallas call."""
    n, in_f = x.shape
    out_f = weight.shape[1]
    assert adj.shape == (n, n)
    assert bias.shape == (n, out_f)

    n_p = _round_up(n, 8)        # sublane-dense rows
    f_p = _round_up(out_f, 128)  # lane-dense output columns -> unmasked vst

    x_p = jnp.pad(x, ((0, n_p - n), (0, 0)))
    adj_p = jnp.pad(adj, ((0, n_p - n), (0, n_p - n)))
    w_p = jnp.pad(weight, ((0, 0), (0, f_p - out_f)))
    b_p = jnp.pad(bias, ((0, n_p - n), (0, f_p - out_f)))

    cost = pl.CostEstimate(
        flops=2 * n * in_f * out_f + 2 * n * n * out_f,
        transcendentals=0,
        bytes_accessed=4 * (x.size + adj.size + weight.size + bias.size + n * out_f),
    )

    vmem = pl.BlockSpec(memory_space=pltpu.MemorySpace.VMEM)
    out_p = pl.pallas_call(
        gcn_kernel,
        out_shape=jax.ShapeDtypeStruct((n_p, f_p), jnp.float32),
        in_specs=[vmem, vmem, vmem, vmem],
        out_specs=vmem,
        cost_estimate=cost,
    )(x_p, w_p, adj_p, b_p)

    return out_p[:n, :out_f]


def graph_convolution_layer_batched(x, adj, weight, bias):
    """Same layer applied to B graphs in one call; batch axis is 'parallel'."""
    bsz, n, in_f = x.shape
    out_f = weight.shape[1]
    assert adj.shape == (bsz, n, n)
    assert bias.shape == (n, out_f)

    n_p = _round_up(n, 8)
    f_p = _round_up(out_f, 128)

    x_p = jnp.pad(x, ((0, 0), (0, n_p - n), (0, 0)))
    adj_p = jnp.pad(adj, ((0, 0), (0, n_p - n), (0, n_p - n)))
    w_p = jnp.pad(weight, ((0, 0), (0, f_p - out_f)))
    b_p = jnp.pad(bias, ((0, n_p - n), (0, f_p - out_f)))

    cost = pl.CostEstimate(
        flops=bsz * (2 * n * in_f * out_f + 2 * n * n * out_f),
        transcendentals=0,
        bytes_accessed=4 * (x.size + adj.size + weight.size + bias.size
                            + bsz * n * out_f),
    )

    out_p = pl.pallas_call(
        gcn_batched_kernel,
        out_shape=jax.ShapeDtypeStruct((bsz, n_p, f_p), jnp.float32),
        grid=(bsz,),
        in_specs=[
            pl.BlockSpec((1, n_p, in_f), lambda g: (g, 0, 0)),
            pl.BlockSpec((in_f, f_p), lambda g: (0, 0)),
            pl.BlockSpec((1, n_p, n_p), lambda g: (g, 0, 0)),
            pl.BlockSpec((n_p, f_p), lambda g: (0, 0)),
        ],
        out_specs=pl.BlockSpec((1, n_p, f_p), lambda g: (g, 0, 0)),
        compiler_params=pltpu.CompilerParams(
            dimension_semantics=("parallel",),  # shards across 2 TCs on v7x
        ),
        cost_estimate=cost,
    )(x_p, w_p, adj_p, b_p)

    return out_p[:, :n, :out_f]


# --------------------------------------------------------------------------
# Parameter init (mirrors the PyTorch glorot_init)
# --------------------------------------------------------------------------
def glorot_init(key, input_dim, output_dim):
    init_range = math.sqrt(6.0 / (input_dim + output_dim))
    u = jax.random.uniform(key, (input_dim, output_dim), dtype=jnp.float32)
    return u * 2.0 * init_range - init_range


if __name__ == "__main__":
    # bias is hard-coded to 10 rows in the PyTorch module -> N (num nodes) = 10
    N = 10
    IN_FEATURES = 16
    OUT_FEATURES = 32
    BATCH = 4

    key = jax.random.PRNGKey(0)
    k_x, k_adj, k_w, k_xb, k_adjb = jax.random.split(key, 5)

    # Deterministic parameter init (glorot weight + zero bias).
    weight = glorot_init(k_w, IN_FEATURES, OUT_FEATURES)
    bias = jnp.zeros((N, OUT_FEATURES), dtype=jnp.float32)

    # --- single-graph forward (matches the PyTorch module exactly) ---
    x = jax.random.normal(k_x, (N, IN_FEATURES), dtype=jnp.float32)
    adj_raw = jax.random.uniform(k_adj, (N, N), dtype=jnp.float32)
    adj = (adj_raw + adj_raw.T) * 0.5  # symmetric "adjacency"-ish matrix

    out = graph_convolution_layer(x, adj, weight, bias)
    out = jax.block_until_ready(out)

    ref = adj @ (x @ weight) + bias
    assert not bool(jnp.any(jnp.isnan(out)))
    assert jnp.allclose(out, ref, atol=1e-4, rtol=1e-4), "mismatch vs reference"

    # --- batched forward: amortizes launch/DMA overhead over many graphs ---
    xb = jax.random.normal(k_xb, (BATCH, N, IN_FEATURES), dtype=jnp.float32)
    adjb_raw = jax.random.uniform(k_adjb, (BATCH, N, N), dtype=jnp.float32)
    adjb = (adjb_raw + jnp.swapaxes(adjb_raw, -1, -2)) * 0.5

    out_b = graph_convolution_layer_batched(xb, adjb, weight, bias)
    out_b = jax.block_until_ready(out_b)

    ref_b = jnp.einsum("bij,bjk->bik", adjb, xb @ weight) + bias[None]
    assert not bool(jnp.any(jnp.isnan(out_b)))
    assert jnp.allclose(out_b, ref_b, atol=1e-4, rtol=1e-4), "batched mismatch"

    print("KERNEL_OK")
</pallas_src>

<mosaic_0001>
module attributes {stable_mosaic.version = 11 : i64} {
  func.func @gcn_kernel(%arg0: memref<16x16xf32, #tpu.memory_space<vmem>>, %arg1: memref<16x128xf32, #tpu.memory_space<vmem>>, %arg2: memref<16x16xf32, #tpu.memory_space<vmem>>, %arg3: memref<16x128xf32, #tpu.memory_space<vmem>>, %arg4: memref<16x128xf32, #tpu.memory_space<vmem>>) attributes {dimension_semantics = [], scalar_prefetch = 0 : i64, scratch_operands = 0 : i64, tpu.core_type = #tpu.core_type<tc>} {
    %c0 = arith.constant 0 : index
    %c0_0 = arith.constant 0 : index
    %0 = vector.load %arg0[%c0, %c0_0] : memref<16x16xf32, #tpu.memory_space<vmem>>, vector<16x16xf32>
    %c0_1 = arith.constant 0 : index
    %c0_2 = arith.constant 0 : index
    %1 = vector.load %arg1[%c0_1, %c0_2] : memref<16x128xf32, #tpu.memory_space<vmem>>, vector<16x128xf32>
    %cst = arith.constant dense<0.000000e+00> : vector<16x128xf32>
    %2 = tpu.matmul %0, %1, %cst {dimension_numbers = #tpu.dot_dimension_numbers<[1], [0], [0], [1], [0, 0, 1, 1], [], []>} : vector<16x16xf32>, vector<16x128xf32>, vector<16x128xf32> -> vector<16x128xf32>
    %c0_3 = arith.constant 0 : index
    %c0_4 = arith.constant 0 : index
    %3 = vector.load %arg2[%c0_3, %c0_4] : memref<16x16xf32, #tpu.memory_space<vmem>>, vector<16x16xf32>
    %cst_5 = arith.constant dense<0.000000e+00> : vector<16x128xf32>
    %4 = tpu.matmul %3, %2, %cst_5 {dimension_numbers = #tpu.dot_dimension_numbers<[1], [0], [0], [1], [0, 0, 1, 1], [], []>} : vector<16x16xf32>, vector<16x128xf32>, vector<16x128xf32> -> vector<16x128xf32>
    %c0_6 = arith.constant 0 : index
    %c0_7 = arith.constant 0 : index
    %5 = vector.load %arg3[%c0_6, %c0_7] : memref<16x128xf32, #tpu.memory_space<vmem>>, vector<16x128xf32>
    %6 = arith.addf %4, %5 : vector<16x128xf32>
    %c0_8 = arith.constant 0 : index
    %c0_9 = arith.constant 0 : index
    %7 = vector.load %arg4[%c0_8, %c0_9] : memref<16x128xf32, #tpu.memory_space<vmem>>, vector<16x128xf32>
    tpu.vector_store %arg4[%c0_8, %c0_9], %6 {strides = array<i32>} : memref<16x128xf32, #tpu.memory_space<vmem>>, vector<16x128xf32>,
    return
  }
}

</mosaic_0001>

<bundles_post_ra>
// kernel: tpu_custom_call.1
= control target key start
LH: loop header
LB: loop body
LE: loop exit
PB: predicated region body
PF: predicated region fallthrough
CT: control target
= control target key end

     0   :  { %9 = vsyncpa [#allocation3], 0  ;;  %s472_s0 = inlined_call_operand.hbm [shape: f32[16,16], index: 0, kind: input, shape index: {}]   ;;  %s473_s1 = inlined_call_operand.hbm [shape: f32[16,128], index: 1, kind: input, shape index: {}]   ;;  %s474_s2 = inlined_call_operand.hbm [shape: f32[16,16], index: 2, kind: input, shape index: {}]   ;;  %s475_s3 = inlined_call_operand.hbm [shape: f32[16,128], index: 3, kind: input, shape index: {}]   ;;  %s476_s4 = inlined_call_operand.hbm [shape: f32[16,128], index: 4, kind: output, shape index: {}]  }
   0x1   :  { %10 = vsyncpa [#allocation6], 0 }
   0x2   :  { %11 = vsyncpa [#allocation9], 0 }
   0x3   :  { %12 = vsyncpa [#allocation4], 0  ;;  %s406_s15 = smov [#allocation5]   ;;  %s407_s17 = smov [#allocation2]  }
   0x4   :  { %s30_s16 = sshll.u32 %s406_s15, 4  ;;  %s18_s18 = sshll.u32 %s407_s17, 4  ;;  %s31_s16 = int_to_ptr.vmem [resolvable:$true] %s30_s16  ;;  %s19_s18 = int_to_ptr.vmem [resolvable:$true] %s18_s18 }
   0x5   :  { %s306_s19 = scalar_lea.vmem %s31_s16, 256  ;;  %p311_p1 = scmp.lt.s32.totalorder %s31_s16, %s31_s16 }
   0x6   :  { %p307_p0 = scmp.ne.s32.totalorder %s31_s16, %s306_s19  ;;  %p312_p2 = scmp.lt.s32.totalorder %s306_s19, %s306_s19 }
   0x8   :  { %p313_p3 = por %p312_p2, %p311_p1 }
   0xa   :  { %p314_p4 = pnand %p313_p3, %p307_p0 }
   0xc   :  { %317 = shalt.err (!%p314_p4)
}
   0xd   :  { %s408_s20 = smov 128   ;;  %s409_s21 = smov 8  }
   0xe   :  { %36 = dma.hbm_to_vmem [thread:$0]  %s473_s1, 256, %s31_s16, [#allocation6], %s408_s20, %s408_s20, %s409_s21  }
   0xf   :  { %s326_s24 = scalar_lea.vmem %s19_s18, 256  ;;  %p331_p6 = scmp.lt.s32.totalorder %s19_s18, %s19_s18 }
  0x10   :  { %p327_p5 = scmp.ne.s32.totalorder %s19_s18, %s326_s24  ;;  %p332_p7 = scmp.lt.s32.totalorder %s326_s24, %s326_s24 }
  0x12   :  { %p333_p8 = por %p332_p7, %p331_p6 }
  0x14   :  { %p334_p9 = pnand %p333_p8, %p327_p5 }
  0x16   :  { %337 = shalt.err (!%p334_p9)
}
  0x17   :  { %24 = dma.hbm_to_vmem [thread:$0]  %s472_s0, 256, %s19_s18, [#allocation3], %s408_s20, %s408_s20, %s409_s21  }
  0x18   :  { %s410_s27 = smov [#allocation7]   ;;  %s411_s29 = smov [#allocation8]  }
  0x19   :  { %s42_s28 = sshll.u32 %s410_s27, 4  ;;  %s54_s30 = sshll.u32 %s411_s29, 4  ;;  %s43_s28 = int_to_ptr.vmem [resolvable:$true] %s42_s28  ;;  %s55_s30 = int_to_ptr.vmem [resolvable:$true] %s54_s30 }
  0x1a   :  { %s346_s1 = scalar_lea.vmem %s43_s28, 256  ;;  %p351_p11 = scmp.lt.s32.totalorder %s43_s28, %s43_s28 }
  0x1b   :  { %p347_p10 = scmp.ne.s32.totalorder %s43_s28, %s346_s1  ;;  %p352_p12 = scmp.lt.s32.totalorder %s346_s1, %s346_s1 }
  0x1d   :  { %p353_p13 = por %p352_p12, %p351_p11 }
  0x1f   :  { %p354_p0 = pnand %p353_p13, %p347_p10 }
  0x21   :  { %357 = shalt.err (!%p354_p0)
}
  0x22   :  { %48 = dma.hbm_to_vmem [thread:$0]  %s474_s2, 256, %s43_s28, [#allocation6], %s408_s20, %s408_s20, %s409_s21  }
  0x23   :  { %s366_s0 = scalar_lea.vmem %s55_s30, 256  ;;  %p371_p2 = scmp.lt.s32.totalorder %s55_s30, %s55_s30 }
  0x24   :  { %p367_p1 = scmp.ne.s32.totalorder %s55_s30, %s366_s0  ;;  %p372_p3 = scmp.lt.s32.totalorder %s366_s0, %s366_s0 }
  0x26   :  { %p373_p4 = por %p372_p3, %p371_p2 }
  0x28   :  { %p374_p5 = pnand %p373_p4, %p367_p1 }
  0x2a   :  { %377 = shalt.err (!%p374_p5)
}
  0x2b   :  { %60 = dma.hbm_to_vmem [thread:$0]  %s475_s3, 256, %s55_s30, [#allocation9], %s408_s20, %s408_s20, %s409_s21  }
  0x2c   :  { %398 = dma.done.wait [#allocation3], 256  }
  0x2d   :  { %399 = vsyncadd [#allocation3], 4294967040 }
  0x2e   :  { %400 = dma.done.wait [#allocation6], 512  }
  0x2f   :  { %401 = vsyncadd [#allocation6], 4294966784 }
  0x30   :  { %402 = dma.done.wait [#allocation9], 256  }
  0x31   :  { %403 = vsyncadd [#allocation9], 4294967040  ;;  %vm77_vm0 = vcmask 130048   ;;  %v76_v0 = vld [vmem:[#allocation5 + $0x8] sm:$0xff]  ;;  %v75_v1 = vld [vmem:[#allocation5] sm:$0xff]  ;;  %s412_s2 = smov [#allocation10]  }
  0x32   :  { %v73_v2 = vld [vmem:[#allocation2] sm:$0xff]  ;;  %277 = vmatprep.subr.mxu0 %v76_v0  ;;  %v74_v3 = vld [vmem:[#allocation2 + $0x8] sm:$0xff]  ;;  %v162_v8 = vld [vmem:[#allocation8 + $0x8] sm:$0xff]  ;;  %s251_s3 = sshll.u32 %s412_s2, 4  ;;  %s252_s3 = int_to_ptr.vmem [resolvable:$true] %s251_s3 }
  0x33   :  { %281 = vmatprep.mubr.msk.f32.mxu0 %vm77_vm0, %v73_v2  ;;  %278 = vmatpush3.msra.mxu0 %v76_v0  ;;  %v159_v4 = vld [vmem:[#allocation7] sm:$0xff]  ;;  %v160_v7 = vld [vmem:[#allocation7 + $0x8] sm:$0xff]  ;;  %v161_v10 = vld [vmem:[#allocation8] sm:$0xff]  ;;  %s378_s9 = scalar_lea.vmem %s252_s3, 256  ;;  %p383_p7 = scmp.lt.s32.totalorder %s252_s3, %s252_s3 }
  0x34   :  { %279 = vmatprep.subr.mxu0 %v75_v1  ;;  %288 = vmatprep.mubr.msk.f32.mxu1 %vm77_vm0, %v159_v4  ;;  %p379_p6 = scmp.ne.s32.totalorder %s252_s3, %s378_s9  ;;  %p384_p8 = scmp.lt.s32.totalorder %s378_s9, %s378_s9 }
  0x35   :  { %280 = vmatpush3.msra.mxu0 %v75_v1 }
  0x36   :  { %282 = vmatmul.mubr.msk.f32.vlgmr.msra.gmra.mxu0 %vm77_vm0, %v74_v3  ;;  %p385_p9 = por %p384_p8, %p383_p7 }
  0x38   :  { %p386_p10 = pnand %p385_p9, %p379_p6 }
  0xf6   :  { %v283_v5 = vpop.f32.mrf.mxu0 }
  0xf7   :  { %284 = vmatprep.subr.mxu1 %v283_v5 }
  0xf8   :  { %v150_v6 = vpop.f32.mrf.mxu0  ;;  %285 = vmatpush3.msra.mxu1 %v283_v5 }
  0xf9   :  { %286 = vmatprep.subr.mxu1 %v150_v6 }
  0xfa   :  { %287 = vmatpush3.msra.mxu1 %v150_v6 }
  0xfb   :  { %289 = vmatmul.mubr.msk.f32.vlgmr.msra.gmra.mxu1 %vm77_vm0, %v160_v7 }
 0x1bb   :  { %v290_v9 = vpop.f32.mrf.mxu1 }
 0x1bc   :  { %v241_v11 = vadd.f32 %v290_v9, %v162_v8 }
 0x1bd   :  { %v235_v12 = vpop.f32.mrf.mxu1 }
 0x1be   :  { %245 = vst [vmem:[#allocation10 + $0x8] sm:$0xff] %v241_v11  ;;  %v236_v13 = vadd.f32 %v235_v12, %v161_v10 }
 0x1c0   :  { %244 = vst [vmem:[#allocation10] sm:$0xff] %v236_v13 }
 0x1c1   :  { %389 = shalt.err (!%p386_p10)
}
 0x1c2   :  { %257 = dma.vmem_to_hbm [thread:$0]  %s252_s3, 256, %s476_s4, [#allocation4], %s408_s20, %s408_s20, %s409_s21  }
 0x1c3   :  { %404 = dma.done.wait [#allocation4], 256  }
 0x1c4   :  { %405 = vsyncadd [#allocation4], 4294967040 }
 0x1c5   :  { %261 = vsyncpa [#allocation3], 1 }
 0x1c6   :  { %262 = vsyncpa [#allocation6], 1 }
 0x1c7   :  { %263 = vsyncpa [#allocation9], 1 }
 0x1c8   :  { %264 = vsyncpa [#allocation4], 1 }

</bundles_post_ra>
